<compile_context>
chip_gen: v6e
topology: v6e:2x2x1
jax: 0.10.0
libtpu: 0.0.40
codegen_flags: <defaults>
</compile_context>

<pallas_src>
import functools

import jax
import jax.numpy as jnp
from jax import lax
from jax.experimental import pallas as pl
from jax.experimental.pallas import tpu as pltpu

_MASK_VALUE = -1.0e30  # finite "minus infinity" for in-kernel causal masking


# --------------------------------------------------------------------------
# Kernel body (shared by masked / unmasked variants)
# --------------------------------------------------------------------------
def _flash_attn_step(q_ref, k_ref, v_ref, mask_ref, o_ref,
                     qs_sc, m_sc, l_sc, acc_sc,
                     *, scale, group, causal, mm_dtype):
    tq = q_ref.shape[2]
    D = q_ref.shape[3]
    tk = k_ref.shape[2]
    rows = group * tq

    qi = pl.program_id(2)
    kv_i = pl.program_id(3)

    @pl.when(kv_i == 0)
    def _init():
        # Fold the softmax scale into Q once per (b, kv_head, q_tile).
        q = q_ref[0].reshape(rows, D).astype(jnp.float32) * scale
        qs_sc[...] = q.astype(mm_dtype)
        m_sc[...] = jnp.full((rows, 1), -jnp.inf, dtype=jnp.float32)
        l_sc[...] = jnp.zeros((rows, 1), dtype=jnp.float32)
        acc_sc[...] = jnp.zeros((rows, D), dtype=jnp.float32)

    def _body():
        k = k_ref[0, 0].astype(mm_dtype)          # (tk, D)
        v = v_ref[0, 0].astype(mm_dtype)          # (tk, D)

        # (group*tq, D) @ (tk, D)^T contracted on the last axis of both.
        s = lax.dot_general(qs_sc[...], k, (((1,), (1,)), ((), ())),
                            preferred_element_type=jnp.float32)  # (rows, tk)

        if mask_ref is not None:
            bias = mask_ref[0, 0].astype(jnp.float32)            # (tq, tk)
            s = (s.reshape(group, tq, tk) + bias[None]).reshape(rows, tk)
        elif causal:
            q_pos = qi * tq + lax.broadcasted_iota(jnp.int32, (tq, tk), 0)
            k_pos = kv_i * tk + lax.broadcasted_iota(jnp.int32, (tq, tk), 1)
            keep = (k_pos <= q_pos)[None]                        # (1, tq, tk)
            s = jnp.where(keep, s.reshape(group, tq, tk),
                          _MASK_VALUE).reshape(rows, tk)

        m_prev = m_sc[...]
        m_new = jnp.maximum(m_prev, jnp.max(s, axis=-1, keepdims=True))
        alpha = jnp.exp(m_prev - m_new)
        p = jnp.exp(s - m_new)                                   # unnormalized
        l_sc[...] = alpha * l_sc[...] + jnp.sum(p, axis=-1, keepdims=True)
        acc_sc[...] = alpha * acc_sc[...] + lax.dot_general(
            p.astype(mm_dtype), v, (((1,), (0,)), ((), ())),
            preferred_element_type=jnp.float32)
        m_sc[...] = m_new

    if causal and mask_ref is None:
        # Skip fully-masked kv tiles (~2x fewer matmuls / exps for causal).
        @pl.when(kv_i * tk < (qi + 1) * tq)
        def _():
            _body()
    else:
        _body()

    @pl.when(kv_i == pl.num_programs(3) - 1)
    def _finalize():
        inv_l = pl.reciprocal(l_sc[...], approx=False)           # (rows, 1)
        o = (acc_sc[...] * inv_l).reshape(group, tq, D)
        # Lane-dense (tq, group*D) output slab: per-head lane slices.
        for g in range(group):
            o_ref[0, 0, :, g * D:(g + 1) * D] = o[g].astype(o_ref.dtype)


def _attn_kernel_masked(q_ref, k_ref, v_ref, mask_ref, o_ref,
                        qs_sc, m_sc, l_sc, acc_sc,
                        *, scale, group, mm_dtype):
    _flash_attn_step(q_ref, k_ref, v_ref, mask_ref, o_ref,
                     qs_sc, m_sc, l_sc, acc_sc,
                     scale=scale, group=group, causal=False, mm_dtype=mm_dtype)


def _attn_kernel_nomask(q_ref, k_ref, v_ref, o_ref,
                        qs_sc, m_sc, l_sc, acc_sc,
                        *, scale, group, causal, mm_dtype):
    _flash_attn_step(q_ref, k_ref, v_ref, None, o_ref,
                     qs_sc, m_sc, l_sc, acc_sc,
                     scale=scale, group=group, causal=causal, mm_dtype=mm_dtype)


# --------------------------------------------------------------------------
# Wrapper
# --------------------------------------------------------------------------
def _pick_tile(dim, max_tile):
    """Largest 128-multiple divisor of `dim` that is <= max_tile, else the
    whole dim (whole-dim blocks are always layout-legal)."""
    if dim <= max_tile:
        return dim
    t = (max_tile // 128) * 128
    while t >= 128:
        if dim % t == 0:
            return t
        t -= 128
    # TODO(synk): ragged S (no 128-aligned divisor) -> padded-tile path.
    return dim


def core_attention(query, key, value, attention_mask=None, *, scale=None,
                   is_causal=False, allow_bf16_matmul=False):
    """query: (B, S, H, D); key/value: (B, S, KH, D) with H % KH == 0;
    attention_mask: (B, 1, S, S) additive or None.  Returns (B, S, H, D).

    is_causal=True generates a causal mask in-kernel (attention_mask must be
    None).  allow_bf16_matmul=True runs f32-input matmuls on the bf16 MXU
    fast path with f32 accumulation (standard flash-attention numerics)."""
    B, S, H, D = query.shape
    _, Sk, KH, Dk = key.shape
    assert Dk == D and value.shape == key.shape and Sk == S
    assert H % KH == 0
    group = H // KH
    if scale is None:
        scale = D ** (-0.5)
    scale = float(scale)
    assert not (is_causal and attention_mask is not None), \
        "pass either is_causal=True or an additive attention_mask, not both"

    # (B, S, H, D) -> (B, H, S, D): MXU-friendly (tile, head_dim) blocks.
    q = jnp.transpose(query, (0, 2, 1, 3))      # (B, H,  S, D)
    k = jnp.transpose(key, (0, 2, 1, 3))        # (B, KH, S, D)
    v = jnp.transpose(value, (0, 2, 1, 3))      # (B, KH, S, D)

    tk = _pick_tile(S, 512)
    tq_cap = min(512, max(128, 1024 // group))  # budget rows-per-step
    tq = _pick_tile(S, tq_cap)
    assert S % tq == 0 and S % tk == 0
    grid = (B, KH, S // tq, S // tk)
    rows = group * tq

    in_dtype = query.dtype
    mm_dtype = (jnp.bfloat16
                if (allow_bf16_matmul and in_dtype == jnp.float32)
                else in_dtype)

    q_spec = pl.BlockSpec((1, group, tq, D), lambda b, h, qi, ki: (b, h, qi, 0))
    kv_spec = pl.BlockSpec((1, 1, tk, D), lambda b, h, qi, ki: (b, h, ki, 0))
    o_spec = pl.BlockSpec((1, 1, tq, group * D),
                          lambda b, h, qi, ki: (b, h, qi, 0))
    scratch = [pltpu.VMEM((rows, D), mm_dtype),       # scaled Q (resident)
               pltpu.VMEM((rows, 1), jnp.float32),    # running max m
               pltpu.VMEM((rows, 1), jnp.float32),    # running sum l
               pltpu.VMEM((rows, D), jnp.float32)]    # output accumulator

    if attention_mask is not None:
        assert attention_mask.shape == (B, 1, S, S)
        mask = attention_mask
        if mask.dtype == jnp.float32:
            mask = mask.astype(jnp.bfloat16)   # halve the largest HBM stream
        mask_spec = pl.BlockSpec((1, 1, tq, tk),
                                 lambda b, h, qi, ki: (b, 0, qi, ki))
        kernel = functools.partial(_attn_kernel_masked, scale=scale,
                                   group=group, mm_dtype=mm_dtype)
        in_specs = [q_spec, kv_spec, kv_spec, mask_spec]
        args = (q, k, v, mask)
    else:
        # No mask DMA at all; causal mask (if any) generated in-kernel.
        kernel = functools.partial(_attn_kernel_nomask, scale=scale,
                                   group=group, causal=is_causal,
                                   mm_dtype=mm_dtype)
        in_specs = [q_spec, kv_spec, kv_spec]
        args = (q, k, v)

    out = pl.pallas_call(
        kernel,
        out_shape=jax.ShapeDtypeStruct((B, KH, S, group * D), query.dtype),
        grid_spec=pltpu.PrefetchScalarGridSpec(
            num_scalar_prefetch=0,
            grid=grid,
            in_specs=in_specs,
            out_specs=o_spec,
            scratch_shapes=scratch),
        compiler_params=pltpu.CompilerParams(
            dimension_semantics=("parallel", "parallel", "parallel",
                                 "arbitrary"),
            vmem_limit_bytes=48 * 1024 * 1024),
    )(*args)

    # (B, KH, S, group*D) -> (B, S, H, D); head h = kh*group + g.
    out = out.reshape(B, KH, S, group, D)
    out = jnp.transpose(out, (0, 2, 1, 3, 4)).reshape(B, S, H, D)
    return out


class Attention:
    """Mirror of the PyTorch `Attention` module (eager CoreAttention path).

    No learned parameters; all compute happens in core_attention.  GQA
    (num_key_value_heads < num_attention_heads) is handled via the K/V
    index_map and per-step head grouping inside core_attention."""

    def __init__(self, hidden_size, num_attention_heads,
                 num_key_value_heads=None, allow_bf16_matmul=False):
        self.hidden_size = hidden_size
        self.num_attention_heads = num_attention_heads
        self.head_dim = hidden_size // num_attention_heads
        self.num_key_value_heads = (
            num_key_value_heads if num_key_value_heads is not None
            else num_attention_heads)
        self.scale = self.head_dim ** (-0.5)
        self.allow_bf16_matmul = allow_bf16_matmul

    def __call__(self, query, key, value, attention_mask=None,
                 is_causal=False):
        bs, seqlen, head_num, head_dim = query.shape
        assert head_num == self.num_attention_heads and head_dim == self.head_dim
        return core_attention(query, key, value, attention_mask,
                              scale=self.scale, is_causal=is_causal,
                              allow_bf16_matmul=self.allow_bf16_matmul)


# --------------------------------------------------------------------------
# Reference + test
# --------------------------------------------------------------------------
def _reference(query, key, value, attention_mask, scale):
    B, S, H, D = query.shape
    KH = key.shape[2]
    if KH != H:
        rep = H // KH
        key = jnp.repeat(key, rep, axis=2)
        value = jnp.repeat(value, rep, axis=2)
    q = jnp.transpose(query, (0, 2, 1, 3))
    k = jnp.transpose(key, (0, 2, 1, 3))
    v = jnp.transpose(value, (0, 2, 1, 3))
    w = jnp.einsum("bhqd,bhkd->bhqk", q, k) * scale
    if attention_mask is not None:
        w = w + attention_mask
    w = jax.nn.softmax(w.astype(jnp.float32), axis=-1).astype(q.dtype)
    o = jnp.einsum("bhqk,bhkd->bhqd", w, v)
    return jnp.transpose(o, (0, 2, 1, 3))


def _causal_mask(B, S, dtype):
    causal = jnp.tril(jnp.ones((S, S), dtype=bool))
    m = jnp.where(causal, 0.0, -1e9).astype(dtype)
    return jnp.broadcast_to(m[None, None], (B, 1, S, S))


if __name__ == "__main__":
    key0 = jax.random.PRNGKey(0)

    # Case 1: module-consistent small shapes (hidden=128, heads=4 -> D=32),
    # streamed additive causal mask, via the Attention class.
    B, S, H, D = 2, 8, 4, 32
    kq, kk, kv, key0 = jax.random.split(key0, 4)
    q1 = jax.random.normal(kq, (B, S, H, D), dtype=jnp.float32)
    k1 = jax.random.normal(kk, (B, S, H, D), dtype=jnp.float32)
    v1 = jax.random.normal(kv, (B, S, H, D), dtype=jnp.float32)
    m1 = _causal_mask(B, S, jnp.float32)
    attn = Attention(hidden_size=H * D, num_attention_heads=H,
                     num_key_value_heads=H)
    out1 = jax.block_until_ready(attn(q1, k1, v1, m1))
    ref1 = _reference(q1, k1, v1, m1, attn.scale)
    assert out1.shape == (B, S, H, D), out1.shape
    assert jnp.allclose(out1, ref1, atol=5e-5, rtol=1e-5), \
        float(jnp.max(jnp.abs(out1 - ref1)))

    # Case 2: larger-tile streamed-mask path (S=512, D=64).
    B2, S2, D2 = 1, 512, 64
    kq, kk, kv, key0 = jax.random.split(key0, 4)
    q2 = jax.random.normal(kq, (B2, S2, 2, D2), dtype=jnp.float32)
    k2 = jax.random.normal(kk, (B2, S2, 2, D2), dtype=jnp.float32)
    v2 = jax.random.normal(kv, (B2, S2, 2, D2), dtype=jnp.float32)
    m2 = _causal_mask(B2, S2, jnp.float32)
    out2 = jax.block_until_ready(
        core_attention(q2, k2, v2, m2, scale=D2 ** -0.5))
    ref2 = _reference(q2, k2, v2, m2, D2 ** -0.5)
    assert jnp.allclose(out2, ref2, atol=5e-5, rtol=1e-5), \
        float(jnp.max(jnp.abs(out2 - ref2)))

    # Case 3: no mask + GQA (4 query heads, 2 kv heads -> group=2, lane-dense
    # 128-wide output slab, per-step K/V reuse).
    kq, kk, kv, key0 = jax.random.split(key0, 4)
    q3 = jax.random.normal(kq, (B2, S2, 4, D2), dtype=jnp.float32)
    k3 = jax.random.normal(kk, (B2, S2, 2, D2), dtype=jnp.float32)
    v3 = jax.random.normal(kv, (B2, S2, 2, D2), dtype=jnp.float32)
    out3 = jax.block_until_ready(
        core_attention(q3, k3, v3, None, scale=D2 ** -0.5))
    ref3 = _reference(q3, k3, v3, None, D2 ** -0.5)
    assert jnp.allclose(out3, ref3, atol=5e-5, rtol=1e-5), \
        float(jnp.max(jnp.abs(out3 - ref3)))

    # Case 4: in-kernel causal fast path (no mask streamed, masked-tile skip),
    # multi-kv-tile online softmax (S=1024 -> 2x2 q/kv tiles), GQA.
    S4 = 1024
    kq, kk, kv, key0 = jax.random.split(key0, 4)
    q4 = jax.random.normal(kq, (B2, S4, 4, D2), dtype=jnp.float32)
    k4 = jax.random.normal(kk, (B2, S4, 2, D2), dtype=jnp.float32)
    v4 = jax.random.normal(kv, (B2, S4, 2, D2), dtype=jnp.float32)
    out4 = jax.block_until_ready(
        core_attention(q4, k4, v4, None, scale=D2 ** -0.5, is_causal=True))
    ref4 = _reference(q4, k4, v4, _causal_mask(B2, S4, jnp.float32),
                      D2 ** -0.5)
    assert jnp.allclose(out4, ref4, atol=5e-5, rtol=1e-5), \
        float(jnp.max(jnp.abs(out4 - ref4)))

    # Case 5: opt-in bf16 MXU fast path for f32 inputs (flash-attn numerics).
    out5 = jax.block_until_ready(
        core_attention(q3, k3, v3, None, scale=D2 ** -0.5,
                       allow_bf16_matmul=True))
    assert jnp.allclose(out5, ref3, atol=5e-2, rtol=5e-2), \
        float(jnp.max(jnp.abs(out5 - ref3)))

    print("KERNEL_OK")
</pallas_src>

<mosaic_0001>
module attributes {stable_mosaic.version = 11 : i64} {
  func.func @_attn_kernel_masked(%arg0: i32, %arg1: i32, %arg2: i32, %arg3: i32, %arg4: memref<1x1x8x32xf32, #tpu.memory_space<vmem>>, %arg5: memref<1x1x8x32xf32, #tpu.memory_space<vmem>>, %arg6: memref<1x1x8x32xf32, #tpu.memory_space<vmem>>, %arg7: memref<1x1x8x8xbf16, #tpu.memory_space<vmem>>, %arg8: memref<1x1x8x32xf32, #tpu.memory_space<vmem>>, %arg9: memref<8x32xf32, #tpu.memory_space<vmem>>, %arg10: memref<8x1xf32, #tpu.memory_space<vmem>>, %arg11: memref<8x1xf32, #tpu.memory_space<vmem>>, %arg12: memref<8x32xf32, #tpu.memory_space<vmem>>) attributes {dimension_semantics = [#tpu.dimension_semantics<parallel>, #tpu.dimension_semantics<parallel>, #tpu.dimension_semantics<parallel>, #tpu.dimension_semantics<arbitrary>], iteration_bounds = array<i64: 2, 4, 1, 1>, scalar_prefetch = 0 : i64, scratch_operands = 4 : i64, tpu.core_type = #tpu.core_type<tc>, window_params = [{transform_indices = @transform_0, window_bounds = array<i64: 1, 1, 8, 32>}, {transform_indices = @transform_1, window_bounds = array<i64: 1, 1, 8, 32>}, {transform_indices = @transform_2, window_bounds = array<i64: 1, 1, 8, 32>}, {transform_indices = @transform_3, window_bounds = array<i64: 1, 1, 8, 8>}, {transform_indices = @transform_4, window_bounds = array<i64: 1, 1, 8, 32>}]} {
    %c0_i32 = arith.constant 0 : i32
    %0 = arith.cmpi eq, %arg3, %c0_i32 : i32
    %1 = arith.extui %0 : i1 to i32
    %c0_i32_0 = arith.constant 0 : i32
    %2 = arith.cmpi ne, %1, %c0_i32_0 : i32
    scf.if %2 {
      %c0_31 = arith.constant 0 : index
      %c0_32 = arith.constant 0 : index
      %c0_33 = arith.constant 0 : index
      %c0_34 = arith.constant 0 : index
      %41 = vector.load %arg4[%c0_31, %c0_32, %c0_33, %c0_34] : memref<1x1x8x32xf32, #tpu.memory_space<vmem>>, vector<1x1x8x32xf32>
      %42 = vector.shape_cast %41 : vector<1x1x8x32xf32> to vector<1x8x32xf32>
      %43 = vector.shape_cast %42 : vector<1x8x32xf32> to vector<8x32xf32>
      %cst_35 = arith.constant 0.176776692 : f32
      %44 = vector.broadcast %cst_35 : f32 to vector<8x32xf32>
      %45 = arith.mulf %43, %44 : vector<8x32xf32>
      %c0_36 = arith.constant 0 : index
      %c0_37 = arith.constant 0 : index
      %46 = vector.load %arg9[%c0_36, %c0_37] : memref<8x32xf32, #tpu.memory_space<vmem>>, vector<8x32xf32>
      tpu.vector_store %arg9[%c0_36, %c0_37], %45 {strides = array<i32>} : memref<8x32xf32, #tpu.memory_space<vmem>>, vector<8x32xf32>,
      %cst_38 = arith.constant 0xFF800000 : f32
      %47 = vector.broadcast %cst_38 : f32 to vector<8x1xf32>
      %c0_39 = arith.constant 0 : index
      %c0_40 = arith.constant 0 : index
      %48 = vector.load %arg10[%c0_39, %c0_40] : memref<8x1xf32, #tpu.memory_space<vmem>>, vector<8x1xf32>
      tpu.vector_store %arg10[%c0_39, %c0_40], %47 {strides = array<i32>} : memref<8x1xf32, #tpu.memory_space<vmem>>, vector<8x1xf32>,
      %cst_41 = arith.constant 0.000000e+00 : f32
      %49 = vector.broadcast %cst_41 : f32 to vector<8x1xf32>
      %c0_42 = arith.constant 0 : index
      %c0_43 = arith.constant 0 : index
      %50 = vector.load %arg11[%c0_42, %c0_43] : memref<8x1xf32, #tpu.memory_space<vmem>>, vector<8x1xf32>
      tpu.vector_store %arg11[%c0_42, %c0_43], %49 {strides = array<i32>} : memref<8x1xf32, #tpu.memory_space<vmem>>, vector<8x1xf32>,
      %cst_44 = arith.constant 0.000000e+00 : f32
      %51 = vector.broadcast %cst_44 : f32 to vector<8x32xf32>
      %c0_45 = arith.constant 0 : index
      %c0_46 = arith.constant 0 : index
      %52 = vector.load %arg12[%c0_45, %c0_46] : memref<8x32xf32, #tpu.memory_space<vmem>>, vector<8x32xf32>
      tpu.vector_store %arg12[%c0_45, %c0_46], %51 {strides = array<i32>} : memref<8x32xf32, #tpu.memory_space<vmem>>, vector<8x32xf32>,
    } else {
    }
    %c0 = arith.constant 0 : index
    %c0_1 = arith.constant 0 : index
    %c0_2 = arith.constant 0 : index
    %c0_3 = arith.constant 0 : index
    %3 = vector.load %arg5[%c0, %c0_1, %c0_2, %c0_3] : memref<1x1x8x32xf32, #tpu.memory_space<vmem>>, vector<1x1x8x32xf32>
    %4 = vector.shape_cast %3 : vector<1x1x8x32xf32> to vector<8x32xf32>
    %c0_4 = arith.constant 0 : index
    %c0_5 = arith.constant 0 : index
    %c0_6 = arith.constant 0 : index
    %c0_7 = arith.constant 0 : index
    %5 = vector.load %arg6[%c0_4, %c0_5, %c0_6, %c0_7] : memref<1x1x8x32xf32, #tpu.memory_space<vmem>>, vector<1x1x8x32xf32>
    %6 = vector.shape_cast %5 : vector<1x1x8x32xf32> to vector<8x32xf32>
    %c0_8 = arith.constant 0 : index
    %c0_9 = arith.constant 0 : index
    %7 = vector.load %arg9[%c0_8, %c0_9] : memref<8x32xf32, #tpu.memory_space<vmem>>, vector<8x32xf32>
    %cst = arith.constant dense<0.000000e+00> : vector<8x8xf32>
    %8 = tpu.matmul %7, %4, %cst {dimension_numbers = #tpu.dot_dimension_numbers<[1], [1], [0], [0], [0, 0, 1, 0], [], []>} : vector<8x32xf32>, vector<8x32xf32>, vector<8x8xf32> -> vector<8x8xf32>
    %c0_10 = arith.constant 0 : index
    %c0_11 = arith.constant 0 : index
    %c0_12 = arith.constant 0 : index
    %c0_13 = arith.constant 0 : index
    %9 = vector.load %arg7[%c0_10, %c0_11, %c0_12, %c0_13] : memref<1x1x8x8xbf16, #tpu.memory_space<vmem>>, vector<1x1x8x8xbf16>
    %10 = vector.shape_cast %9 : vector<1x1x8x8xbf16> to vector<8x8xbf16>
    %11 = arith.extf %10 : vector<8x8xbf16> to vector<8x8xf32>
    %12 = vector.shape_cast %8 : vector<8x8xf32> to vector<1x8x8xf32>
    %13 = vector.shape_cast %11 : vector<8x8xf32> to vector<1x8x8xf32>
    %14 = arith.addf %12, %13 : vector<1x8x8xf32>
    %15 = vector.shape_cast %14 : vector<1x8x8xf32> to vector<8x8xf32>
    %c0_14 = arith.constant 0 : index
    %c0_15 = arith.constant 0 : index
    %16 = vector.load %arg10[%c0_14, %c0_15] : memref<8x1xf32, #tpu.memory_space<vmem>>, vector<8x1xf32>
    %cst_16 = arith.constant dense<0xFF800000> : vector<8xf32>
    %17 = vector.multi_reduction <maximumf>, %15, %cst_16 [1] : vector<8x8xf32> to vector<8xf32>
    %18 = vector.shape_cast %17 : vector<8xf32> to vector<8x1xf32>
    %19 = arith.maximumf %16, %18 : vector<8x1xf32>
    %20 = arith.subf %16, %19 : vector<8x1xf32>
    %21 = math.exp %20 : vector<8x1xf32>
    %22 = vector.broadcast %19 : vector<8x1xf32> to vector<8x8xf32>
    %23 = arith.subf %15, %22 : vector<8x8xf32>
    %24 = math.exp %23 : vector<8x8xf32>
    %c0_17 = arith.constant 0 : index
    %c0_18 = arith.constant 0 : index
    %25 = vector.load %arg11[%c0_17, %c0_18] : memref<8x1xf32, #tpu.memory_space<vmem>>, vector<8x1xf32>
    %26 = arith.mulf %21, %25 : vector<8x1xf32>
    %cst_19 = arith.constant dense<0.000000e+00> : vector<8xf32>
    %27 = vector.multi_reduction <add>, %24, %cst_19 [1] : vector<8x8xf32> to vector<8xf32>
    %28 = vector.shape_cast %27 : vector<8xf32> to vector<8x1xf32>
    %29 = arith.addf %26, %28 : vector<8x1xf32>
    %c0_20 = arith.constant 0 : index
    %c0_21 = arith.constant 0 : index
    %30 = vector.load %arg11[%c0_20, %c0_21] : memref<8x1xf32, #tpu.memory_space<vmem>>, vector<8x1xf32>
    tpu.vector_store %arg11[%c0_20, %c0_21], %29 {strides = array<i32>} : memref<8x1xf32, #tpu.memory_space<vmem>>, vector<8x1xf32>,
    %c0_22 = arith.constant 0 : index
    %c0_23 = arith.constant 0 : index
    %31 = vector.load %arg12[%c0_22, %c0_23] : memref<8x32xf32, #tpu.memory_space<vmem>>, vector<8x32xf32>
    %32 = vector.broadcast %21 : vector<8x1xf32> to vector<8x32xf32>
    %33 = arith.mulf %32, %31 : vector<8x32xf32>
    %cst_24 = arith.constant dense<0.000000e+00> : vector<8x32xf32>
    %34 = tpu.matmul %24, %6, %cst_24 {dimension_numbers = #tpu.dot_dimension_numbers<[1], [0], [0], [1], [0, 0, 1, 1], [], []>} : vector<8x8xf32>, vector<8x32xf32>, vector<8x32xf32> -> vector<8x32xf32>
    %35 = arith.addf %33, %34 : vector<8x32xf32>
    %c0_25 = arith.constant 0 : index
    %c0_26 = arith.constant 0 : index
    %36 = vector.load %arg12[%c0_25, %c0_26] : memref<8x32xf32, #tpu.memory_space<vmem>>, vector<8x32xf32>
    tpu.vector_store %arg12[%c0_25, %c0_26], %35 {strides = array<i32>} : memref<8x32xf32, #tpu.memory_space<vmem>>, vector<8x32xf32>,
    %c0_27 = arith.constant 0 : index
    %c0_28 = arith.constant 0 : index
    %37 = vector.load %arg10[%c0_27, %c0_28] : memref<8x1xf32, #tpu.memory_space<vmem>>, vector<8x1xf32>
    tpu.vector_store %arg10[%c0_27, %c0_28], %19 {strides = array<i32>} : memref<8x1xf32, #tpu.memory_space<vmem>>, vector<8x1xf32>,
    %c0_i32_29 = arith.constant 0 : i32
    %38 = arith.cmpi eq, %arg3, %c0_i32_29 : i32
    %39 = arith.extui %38 : i1 to i32
    %c0_i32_30 = arith.constant 0 : i32
    %40 = arith.cmpi ne, %39, %c0_i32_30 : i32
    scf.if %40 {
      %c0_31 = arith.constant 0 : index
      %c0_32 = arith.constant 0 : index
      %41 = vector.load %arg11[%c0_31, %c0_32] : memref<8x1xf32, #tpu.memory_space<vmem>>, vector<8x1xf32>
      %42 = tpu.reciprocal %41 : vector<8x1xf32> -> vector<8x1xf32>
      %c0_33 = arith.constant 0 : index
      %c0_34 = arith.constant 0 : index
      %43 = vector.load %arg12[%c0_33, %c0_34] : memref<8x32xf32, #tpu.memory_space<vmem>>, vector<8x32xf32>
      %44 = vector.broadcast %42 : vector<8x1xf32> to vector<8x32xf32>
      %45 = arith.mulf %43, %44 : vector<8x32xf32>
      %46 = vector.shape_cast %45 : vector<8x32xf32> to vector<1x8x32xf32>
      %47 = vector.shape_cast %46 : vector<1x8x32xf32> to vector<8x32xf32>
      %c0_35 = arith.constant 0 : index
      %c0_36 = arith.constant 0 : index
      %c0_37 = arith.constant 0 : index
      %c0_38 = arith.constant 0 : index
      %48 = vector.load %arg8[%c0_35, %c0_36, %c0_37, %c0_38] : memref<1x1x8x32xf32, #tpu.memory_space<vmem>>, vector<1x1x8x32xf32>
      %49 = vector.shape_cast %48 : vector<1x1x8x32xf32> to vector<8x32xf32>
      %50 = vector.shape_cast %47 : vector<8x32xf32> to vector<1x1x8x32xf32>
      tpu.vector_store %arg8[%c0_35, %c0_36, %c0_37, %c0_38], %50 {strides = array<i32>} : memref<1x1x8x32xf32, #tpu.memory_space<vmem>>, vector<1x1x8x32xf32>,
    } else {
    }
    return
  }
  func.func @transform_0(%arg0: i32, %arg1: i32, %arg2: i32, %arg3: i32) -> (i32, i32, i32, i32) {
    %c0_i32 = arith.constant 0 : i32
    %c0_i32_0 = arith.constant 0 : i32
    return %arg0, %arg1, %arg2, %c0_i32 : i32, i32, i32, i32
  }
  func.func @transform_1(%arg0: i32, %arg1: i32, %arg2: i32, %arg3: i32) -> (i32, i32, i32, i32) {
    %c0_i32 = arith.constant 0 : i32
    %c0_i32_0 = arith.constant 0 : i32
    return %arg0, %arg1, %arg3, %c0_i32 : i32, i32, i32, i32
  }
  func.func @transform_2(%arg0: i32, %arg1: i32, %arg2: i32, %arg3: i32) -> (i32, i32, i32, i32) {
    %c0_i32 = arith.constant 0 : i32
    %c0_i32_0 = arith.constant 0 : i32
    return %arg0, %arg1, %arg3, %c0_i32 : i32, i32, i32, i32
  }
  func.func @transform_3(%arg0: i32, %arg1: i32, %arg2: i32, %arg3: i32) -> (i32, i32, i32, i32) {
    %c0_i32 = arith.constant 0 : i32
    %c0_i32_0 = arith.constant 0 : i32
    return %arg0, %c0_i32, %arg2, %arg3 : i32, i32, i32, i32
  }
  func.func @transform_4(%arg0: i32, %arg1: i32, %arg2: i32, %arg3: i32) -> (i32, i32, i32, i32) {
    %c0_i32 = arith.constant 0 : i32
    %c0_i32_0 = arith.constant 0 : i32
    return %arg0, %arg1, %arg2, %c0_i32 : i32, i32, i32, i32
  }
}

</mosaic_0001>

<bundles_post_ra>
// kernel: tpu_custom_call.1
= control target key start
LH: loop header
LB: loop body
LE: loop exit
PB: predicated region body
PF: predicated region fallthrough
CT: control target
= control target key end

     0   :  { %s1526_s0 = inlined_call_operand.hbm [shape: f32[2,4,8,32], index: 0, kind: input, shape index: {}]   ;;  %s1527_s1 = inlined_call_operand.hbm [shape: f32[2,4,8,32], index: 1, kind: input, shape index: {}]   ;;  %s1528_s2 = inlined_call_operand.hbm [shape: f32[2,4,8,32], index: 2, kind: input, shape index: {}]   ;;  %s1529_s3 = inlined_call_operand.hbm [shape: bf16[2,1,8,8], index: 3, kind: input, shape index: {}]   ;;  %s1530_s4 = inlined_call_operand.hbm [shape: f32[2,4,8,32], index: 4, kind: output, shape index: {}]  }
   0x1   :  { %1543 = sst [smem:[#allocation26_spill]] %s1526_s0 }
   0x2   :  { %1544 = sst [smem:[#allocation27_spill]] %s1527_s1 }
   0x3   :  { %1545 = sst [smem:[#allocation28_spill]] %s1530_s4 }
   0x4   :  { %9 = vsyncpa [#allocation7], 0 }
   0x5   :  { %11 = vsyncpa [#allocation7 + $0x1], 0 }
   0x6   :  { %12 = vsyncpa [#allocation10], 0 }
   0x7   :  { %14 = vsyncpa [#allocation10 + $0x1], 0 }
   0x8   :  { %15 = vsyncpa [#allocation13], 0 }
   0x9   :  { %17 = vsyncpa [#allocation13 + $0x1], 0 }
   0xa   :  { %18 = vsyncpa [#allocation8], 0 }
   0xb   :  { %20 = vsyncpa [#allocation8 + $0x1], 0  ;;  %s1226_s15 = smov 0   ;;  %s1228_s16 = smov 0  }
   0xc   :  { %s1230_s17 = smov 0   ;;  %s1232_s18 = smov 0  }
   0xd   :  { %s1234_s19 = smov 0   ;;  %s1236_s20 = smov 0  }
   0xe   :  { %s1238_s21 = smov 0   ;;  %s1240_s22 = smov 0  }
   0xf   :  { %s1242_s23 = smov 0   ;;  %s1244_s24 = smov 0  }
  0x10   :  { %s1246_s25 = smov 0  }
  0x11 LB: > { %1546 = sst [smem:[#allocation19_spill]] %s1162_s18  ;;  %s1282_s26 = sadd.s32 4294967295, %s1190_s25   ;;  %s1190_s25 = sphi %s1246_s25, %s26_s25   ;;  %s1186_s24 = sphi %s1244_s24, %s1583_s24   ;;  %s1182_s23 = sphi %s1242_s23, %s1574_s23   ;;  %s1178_s22 = sphi %s1240_s22, %s1582_s22   ;;  %s1174_s21 = sphi %s1238_s21, %s1573_s21   ;;  %s1170_s20 = sphi %s1236_s20, %s1581_s20   ;;  %s1166_s19 = sphi %s1234_s19, %s1580_s19   ;;  %s1162_s18 = sphi %s1232_s18, %s1579_s18   ;;  %s1158_s17 = sphi %s1230_s17, %s1578_s17   ;;  %s1154_s16 = sphi %s1228_s16, %s1577_s16   ;;  %s1150_s15 = sphi %s1226_s15, %s1576_s15  }
  0x12   : > { %1547 = sst [smem:[#allocation20_spill]] %s1182_s23  ;;  %s779_s27 = sadd.s32 4294967294, %s1190_s25  }
  0x13   : > { %s48_s28 = sadd.s32 1, %s1182_s23  ;;  %s52_s29 = sadd.s32 1, %s1186_s24 }
  0x14   : > { %p50_p0 = scmp.ge.s32.totalorder %s48_s28, 4  ;;  %s63_s30 = sadd.s32 1, %s1170_s20 }
  0x15   : > { %p70_p1 = scmp.ne.s32.totalorder %s1170_s20, %s1166_s19  ;;  %p1540_p2 = scmp.eq.s32.totalorder %s1190_s25, 0 }
  0x16   : > { %s1585_s28 = smov (%p50_p0, %s48_s28), 0  ;;  %s1587_s29 = smov (!%p50_p0, %s52_s29), %s1186_s24 }
  0x17   : > { %1548 = sst [smem:[#allocation21_spill]] %s1585_s28  ;;  %s57_s5 = ssub.s32 %s1182_s23, %s1585_s28 }
  0x18   : > { %p1298_p3 = por %p1540_p2, %p70_p1  ;;  %p54_p4 = scmp.ge.s32.totalorder %s1587_s29, 2 }
  0x19   : > { %p76_p5 = scmp.ne.s32.totalorder %s1166_s19, %s1162_s18  ;;  %p1539_p6 = scmp.eq.s32.totalorder %s1282_s26, 0 }
  0x1a   : > { %p194_p7 = scmp.eq.s32.totalorder %s1282_s26, 7  ;;  %s1589_s29 = smov (%p54_p4, %s1587_s29), 0 }
  0x1b   : > { %1550 = sst [smem:[#allocation22_spill]] %s1589_s29  ;;  %p1310_p8 = por %p1539_p6, %p76_p5 }
  0x1c   : > { %p1314_p9 = por %p194_p7, %p70_p1  ;;  %s1320_s9 = ssub.s32 %s1186_s24, %s1589_s29 }
  0x1d   : > { %p200_p10 = scmp.eq.s32.totalorder %s779_s27, 7  ;;  %s58_s10 = sor.u32 %s57_s5, %s1320_s9 }
  0x1e   : > { %s1552_s8 = scalar_select %p1314_p9, 1, 0 }
  0x1f   : > { %p151_p11 = scmp.eq.s32.totalorder %s1320_s9, 0  ;;  %p61_p12 = scmp.eq.s32.totalorder %s58_s10, 0 }
  0x20   : > { %1553 = sst [smem:[#allocation23_spill]] %s1552_s8  ;;  %p1324_p13 = por %p200_p10, %p76_p5 }
  0x21   : > { %p1538_p0 = scmp.lt.s32.totalorder %s1190_s25, 8  ;;  %s1534_s13 = sand.u32 1, %s1170_s20  }
  0x22   : > { %s1554_s11 = scalar_select %p1324_p13, 1, 0 }
  0x23   : > { %s1330_s12 = scalar_select %p61_p12, %s1170_s20, %s63_s30  }
  0x24   : > { %1555 = sst [smem:[#allocation24_spill]] %s1554_s11  ;;  %s783_s14 = sshll.u32 %s1186_s24, 2 }
  0x25   : > { %1556 = sst [smem:[#allocation25_spill]] %s1330_s12  ;;  %s1336_s28 = sshll.u32 %s1534_s13, 3 }
  0x26   : > { %s230_s29 = sadd.s32 %s1182_s23, %s783_s14  ;;  %p1345_p1 = pnand %p1538_p0, %p1298_p3 }
  0x27   : > { %s1339_s18 = sshll.u32 %s230_s29, 7  ;;  %s241_s30 = sand.u32 1, %s1190_s25  }
  0x28   : > { %s1558_s1 = sld [smem:[#allocation27_spill]]  ;;  %s245_s13 = scalar_lea.vmem [#allocation9], %s1336_s28 }
  0x29   : > { %s255_s11 = sshll.u32 %s245_s13, 4  ;;  %p793_p4 = scmp.ge.s32.totalorder %s1190_s25, 1  ;;  %s256_s11 = int_to_ptr.vmem [resolvable:$true] %s255_s11 }
  0x2a   : > { %s1356_s29 = scalar_lea.sflag [#allocation10], %s241_s30  ;;  %p952_p5 = pneg %p1345_p1 }
  0x2b   : > { %s963_s6 = scalar_lea.vmem %s256_s11, 128  ;;  %s1192_s14 = smov [#allocation9]  }
  0x2c   : > { %p964_p3 = scmp.ne.s32.totalorder %s256_s11, %s963_s6  ;;  %s968_s23 = sshll.u32 %s1192_s14, 4  ;;  %s969_s23 = int_to_ptr.vmem [resolvable:$false] %s968_s23 }
  0x2d   : > { %s970_s4 = scalar_lea.vmem %s969_s23, 256  ;;  %p971_p12 = scmp.lt.s32.totalorder %s256_s11, %s969_s23 }
  0x2e   : > { %s253_s12 = scalar_lea.hbm %s1558_s1, %s1339_s18  ;;  %p966_p7 = pnand %p964_p3, %p952_p5 }
  0x2f   : > { %p972_p0 = scmp.lt.s32.totalorder %s970_s4, %s963_s6 }
  0x30   : > { %p967_p10 = pneg %p966_p7 }
  0x31   : > { %p973_p6 = por %p972_p0, %p971_p12 }
  0x33   : > { %p974_p2 = pnand %p973_p6, %p967_p10 }
  0x35   : > { %977 = shalt.err (!%p974_p2)
}
  0x36   : > { %837 = dma.hbm_to_vmem [thread:$0]  (!%p1345_p1), %s253_s12, 128, %s256_s11, %s1356_s29  }
  0x37   : > { %p301_p3 = scmp.lt.s32.totalorder %s1190_s25, 9  ;;  %s1560_s0 = sld [smem:[#allocation26_spill]] }
  0x38   : > { %s224_s5 = scalar_lea.vmem [#allocation6], %s1336_s28  ;;  %s1561_s6 = sand.u32 1, %s1170_s20  }
  0x39   : > { %p1369_p7 = pnand %p793_p4, %p301_p3  ;;  %s234_s10 = sshll.u32 %s224_s5, 4  ;;  %s235_s10 = int_to_ptr.vmem [resolvable:$true] %s234_s10 }
  0x3a   : > { %s221_s14 = scalar_lea.sflag [#allocation7], %s1561_s6  ;;  %s991_s1 = scalar_lea.vmem %s235_s10, 128 }
  0x3b   : > { %p992_p2 = scmp.ne.s32.totalorder %s235_s10, %s991_s1  ;;  %s1193_s11 = smov [#allocation6]  }
  0x3c   : > { %s996_s12 = sshll.u32 %s1193_s11, 4  ;;  %s997_s12 = int_to_ptr.vmem [resolvable:$false] %s996_s12 }
  0x3d   : > { %s232_s30 = scalar_lea.hbm %s1560_s0, %s1339_s18  ;;  %p994_p6 = pnand %p992_p2, %p952_p5 }
  0x3e   : > { %s998_s8 = scalar_lea.vmem %s997_s12, 256  ;;  %p999_p4 = scmp.lt.s32.totalorder %s235_s10, %s997_s12 }
  0x3f   : > { %p995_p0 = pneg %p994_p6  ;;  %p1000_p10 = scmp.lt.s32.totalorder %s998_s8, %s991_s1 }
  0x41   : > { %p1001_p12 = por %p1000_p10, %p999_p4 }
  0x43   : > { %p1002_p3 = pnand %p1001_p12, %p995_p0 }
  0x45   : > { %1005 = shalt.err (!%p1002_p3)
}
  0x46   : > { %834 = dma.hbm_to_vmem [thread:$0]  (!%p1345_p1), %s232_s30, 128, %s235_s10, %s221_s14  }
  0x47   : > { %s274_s5 = scalar_lea.hbm %s1528_s2, %s1339_s18  ;;  %s266_s6 = scalar_lea.vmem [#allocation11], %s1336_s28 }
  0x48   : > { %s276_s0 = sshll.u32 %s266_s6, 4  ;;  %s1194_s1 = smov [#allocation11]   ;;  %s277_s0 = int_to_ptr.vmem [resolvable:$true] %s276_s0 }
  0x49   : > { %s1019_s11 = scalar_lea.vmem %s277_s0, 128  ;;  %s1024_s8 = sshll.u32 %s1194_s1, 4  ;;  %s1025_s8 = int_to_ptr.vmem [resolvable:$false] %s1024_s8 }
  0x4a   : > { %p1020_p2 = scmp.ne.s32.totalorder %s277_s0, %s1019_s11  ;;  %s1026_s12 = scalar_lea.vmem %s1025_s8, 256 }
  0x4b   : > { %p1027_p4 = scmp.lt.s32.totalorder %s277_s0, %s1025_s8  ;;  %p1028_p10 = scmp.lt.s32.totalorder %s1026_s12, %s1019_s11 }
  0x4c   : > { %p1022_p6 = pnand %p1020_p2, %p952_p5 }
  0x4d   : > { %p1029_p12 = por %p1028_p10, %p1027_p4 }
  0x4e   : > { %p1023_p0 = pneg %p1022_p6 }
  0x50   : > { %p1030_p3 = pnand %p1029_p12, %p1023_p0 }
  0x52   : > { %1033 = shalt.err (!%p1030_p3)
}
  0x53   : > { %840 = dma.hbm_to_vmem [thread:$0]  (!%p1345_p1), %s274_s5, 128, %s277_s0, %s1356_s29  }
  0x54   : > { %s153_s18 = sadd.s32 1, %s1158_s17  ;;  %p160_p5 = scmp.ne.s32.totalorder %s1158_s17, %s1154_s16 }
  0x55   : > { %s1400_s28 = scalar_select %p151_p11, %s1158_s17, %s153_s18  }
  0x56   : > { %p166_p2 = scmp.ne.s32.totalorder %s1154_s16, %s1150_s15  ;;  %s283_s27 = sand.u32 1, %s1158_s17  }
  0x57   : > { %s792_s30 = sshll.u32 %s1186_s24, 6  ;;  %p1562_p6 = scmp.eq.s32.totalorder %s1190_s25, 0 }
  0x58   : > { %p1563_p4 = scmp.eq.s32.totalorder %s1282_s26, 0  ;;  %s791_s14 = sshll.u32 %s283_s27, 2 }
  0x59   : > { %p162_p0 = por %p160_p5, %p1562_p6  ;;  %s294_s0 = scalar_lea.hbm %s1529_s3, %s792_s30 }
  0x5a   : > { %p1412_p10 = por %p166_p2, %p1563_p4  ;;  %s287_s29 = scalar_lea.vmem [#allocation12], %s791_s14 }
  0x5b   : > { %s296_s9 = sshll.u32 %s287_s29, 4  ;;  %p1565_p11 = scmp.lt.s32.totalorder %s1190_s25, 8  ;;  %s297_s9 = int_to_ptr.vmem [resolvable:$true] %s296_s9 }
  0x5c   : > { %s284_s15 = scalar_lea.sflag [#allocation13], %s283_s27  ;;  %s1047_s6 = scalar_lea.vmem %s297_s9, 64 }
  0x5d   : > { %p1421_p1 = pnand %p1565_p11, %p162_p0  ;;  %p1048_p3 = scmp.ne.s32.totalorder %s297_s9, %s1047_s6 }
  0x5e   : > { %s1195_s11 = smov [#allocation12]  }
  0x5f   : > { %p1036_p12 = pneg %p1421_p1  ;;  %s1052_s1 = sshll.u32 %s1195_s11, 4  ;;  %s1053_s1 = int_to_ptr.vmem [resolvable:$false] %s1052_s1 }
  0x60   : > { %s1054_s8 = scalar_lea.vmem %s1053_s1, 128  ;;  %p1055_p6 = scmp.lt.s32.totalorder %s297_s9, %s1053_s1 }
  0x61   : > { %p1050_p5 = pnand %p1048_p3, %p1036_p12  ;;  %p1056_p4 = scmp.lt.s32.totalorder %s1054_s8, %s1047_s6 }
  0x63   : > { %p1051_p2 = pneg %p1050_p5  ;;  %p1057_p13 = por %p1056_p4, %p1055_p6 }
  0x65   : > { %p1058_p0 = pnand %p1057_p13, %p1051_p2 }
  0x67   : > { %1061 = shalt.err (!%p1058_p0)
}
  0x68   : > { %843 = dma.hbm_to_vmem [thread:$0]  (!%p1421_p1), %s294_s0, 64, %s297_s9, %s284_s15  }
  0x69   : > { %305 = sbr.rel (%p1369_p7) target bundleno = 909 (0x38d), region = 36  ;;  %s1432_s12 = sand.u32 (!%p1369_p7), 1, %s1166_s19  }
  0x6a   : > { %s1435_s18 = sshll.u32 (!%p1369_p7), %s1432_s12, 3  ;;  %s308_s27 = scalar_lea.sflag (!%p1369_p7), [#allocation7], %s1432_s12 }
  0x6b   : > { %s311_s30 = scalar_lea.vmem (!%p1369_p7), [#allocation6], %s1435_s18 }
  0x6e   : > { %1133 = dma.done.wait (%p1310_p8), %s308_s27, 128  }
  0x6f   : > { %1135 = vsyncadd (%p1310_p8), %s308_s27, 4294967168  ;;  %s316_s13 = sand.u32 1, %s1282_s26   ;;  %s320_s4 = scalar_lea.vmem [#allocation9], %s1435_s18 }
  0x70   : > { %s317_s14 = scalar_lea.sflag [#allocation10], %s316_s13 }
  0x71   : > { %1137 = dma.done.wait (%p1310_p8), %s317_s14, 256  }
  0x72   : > { %1139 = vsyncadd (%p1310_p8), %s317_s14, 4294967040  ;;  %s334_s23 = sand.u32 1, %s1154_s16   ;;  %s329_s29 = scalar_lea.vmem [#allocation11], %s1435_s18 }
  0x73   : > { %s797_s0 = sshll.u32 %s334_s23, 2  ;;  %s335_s9 = scalar_lea.sflag [#allocation13], %s334_s23 }
  0x74   : > { %s338_s5 = scalar_lea.vmem [#allocation12], %s797_s0 }
  0x75   : > { %1141 = dma.done.wait (%p1412_p10), %s335_s9, 64  }
  0x76   : > { %1143 = vsyncadd (%p1412_p10), %s335_s9, 4294967232  ;;  %vm384_vm0 = vcmask 261120   ;;  %v1196_v0 = vmov 0.0   ;;  %vm1197_vm1 = vmmov 0   ;;  %v382_v1 = vld [vmem:[%s311_s30] sm:$0xff]  ;;  %v390_v2 = vld [vmem:[%s320_s4] sm:$0xff] }
  0x77   : > { %811 = vmatprep.subr.mxu0 %v1196_v0  ;;  %389 = vst.msk [vmem:[#allocation5] sm:$0xff] %vm384_vm0, %v1196_v0  ;;  %813 = vmatprep.mubr.msk.f32.mxu0 %vm1197_vm1, %v1196_v0  ;;  %v383_v3 = vmul.f32 0.17677669, %v382_v1  ;;  %vm386_vm2 = vcmask 7168   ;;  %v1198_v5 = vmov -inf   ;;  %vm474_vm3 = vcmask 64512  }
  0x78   : > { %816 = vmatprep.subr.mxu1 %v1196_v0  ;;  %818 = vmatprep.mubr.msk.f32.mxu1 %vm1197_vm1, %v1196_v0  ;;  %387 = vst.msk [vmem:[#allocation3] sm:$0xff] %vm386_vm2, %v1198_v5  ;;  %388 = vst.msk [vmem:[#allocation4] sm:$0xff] %vm386_vm2, %v1196_v0  ;;  %v470_v6 = vld [vmem:[%s338_s5] sm:$0xf]  ;;  %v1199_v12 = vmov 0   ;;  %v391_v17 = vld [vmem:[%s329_s29] sm:$0xff] }
  0x79   : > { %812 = vmatpush3.xpose.msk.msra.mxu0 %vm384_vm0, %v390_v2  ;;  %385 = vst.msk [vmem:[#allocation2] sm:$0xff] %vm384_vm0, %v383_v3  ;;  %v471_v7 = vunpack.c.l.bf16 %v470_v6  ;;  %942 = vset.pattern.permute.xlu0 %v1199_v12  ;;  %s803_s7 = sshll.u32 %s1178_s22, 2  ;;  %s377_s6 = scalar_lea.vmem [#allocation14], %s1435_s18 }
  0x7a   : > { %943 = vset.pattern.permute.xlu1 %v1199_v12  ;;  %817 = vmatpush3.msra.mxu1 %v391_v17  ;;  %s607_s10 = sadd.s32 %s1174_s21, %s803_s7  ;;  %s611_s11 = sshll.u32 %s377_s6, 4  ;;  %s612_s11 = int_to_ptr.vmem [resolvable:$true] %s611_s11 }
  0x7b   : > { %s804_s15 = sshll.u32 %s607_s10, 7  ;;  %s1568_s27 = sld [smem:[#allocation28_spill]] }
  0x7c   : > { %s595_s13 = scalar_lea.sflag [#allocation8], %s1432_s12  ;;  %s1062_s14 = scalar_lea.vmem %s612_s11, 128 }
  0x7d   : > { %p1063_p8 = scmp.ne.s32.totalorder %s612_s11, %s1062_s14  ;;  %s1200_s21 = smov [#allocation14]  }
  0x7e   : > { %v498_v31 = vld [vmem:[#allocation5] sm:$0xff]  ;;  %s1066_s22 = sshll.u32 %s1200_s21, 4  ;;  %s1067_s22 = int_to_ptr.vmem [resolvable:$false] %s1066_s22 }
  0x7f   : > { %v473_v13 = vld [vmem:[#allocation3] sm:$0xff]  ;;  %v490_v25 = vld [vmem:[#allocation4] sm:$0xff]  ;;  %p1064_p13 = pnand %p1063_p8, %p1314_p9  ;;  %s1068_s18 = scalar_lea.vmem %s1067_s22, 256 }
  0x80   : > { %v392_v4 = vld [vmem:[#allocation2] sm:$0xff]  ;;  %p1069_p10 = scmp.lt.s32.totalorder %s612_s11, %s1067_s22  ;;  %p1070_p11 = scmp.lt.s32.totalorder %s1068_s18, %s1062_s14 }
  0x81   : > { %814 = vmatmul.mubr.msk.f32.vlgmr.msra.gmra.mxu0 %vm384_vm0, %v392_v4  ;;  %s609_s30 = scalar_lea.hbm %s1568_s27, %s804_s15  ;;  %p1065_p7 = pneg %p1064_p13 }
  0x82   : > { %p1071_p1 = por %p1070_p11, %p1069_p10 }
  0x84   : > { %p1072_p12 = pnand %p1071_p1, %p1065_p7 }
 0x141   : > { %v466_v8 = vpop.f32.mrf.mxu0 }
 0x142   : > { %v472_v9 = vadd.f32 %v471_v7, %v466_v8 }
 0x143   : > { %v815_v10 = vpop.f32.mrf.mxu0 }
 0x144   : > { %v475_v11 = vsel %vm474_vm3, %v472_v9, -inf }
 0x145   : > { %476 = vmax.xlane.f32.xlu0 %v475_v11 }
 0x1ce   : > { %v477_v14 = vpop.xlane.xlu0 %476 }
 0x1cf   : > { %v478_v15 = vmax.f32 %v473_v13, %v477_v14 }
 0x1d1   : > { %v479_v16 = vsub.f32 %v473_v13, %v478_v15  ;;  %580 = vst.msk [vmem:[#allocation3] sm:$0xff] %vm386_vm2, %v478_v15  ;;  %484 = vperm.xlu0 %942, %v478_v15  }
 0x1d3   : > { %v480_v22 = vmul.f32 1.442695, %v479_v16 }
 0x24c   : > { %v485_v18 = vpop.permute.xlu0 %484 }
 0x24d   : > { %v487_v19 = vsub.f32 %v472_v9, %v485_v18 }
 0x24f   : > { %v488_v20 = vmul.f32 1.442695, %v487_v19 }
 0x251   : > { %944 = vpow2.f32 %v488_v20 }
 0x252   : > { %946 = vpow2.f32 %v480_v22 }
 0x25e   : > { %v945_v21 = vpop.eup %944 }
 0x25f   : > { %819 = vmatmul.mubr.msk.f32.vlgmr.msra.gmra.mxu1 %vm474_vm3, %v945_v21  ;;  %v492_v23 = vsel %vm474_vm3, %v945_v21, 0.0  ;;  %v947_v24 = vpop.eup %946 }
 0x260   : > { %493 = vadd.xlane.f32.xlu1 %v492_v23  ;;  %v491_v26 = vmul.f32 %v947_v24, %v490_v25 }
 0x271   : > { %501 = vperm.xlu1 %943, %v947_v24  }
 0x2e9   : > { %v494_v27 = vpop.xlane.xlu1 %493 }
 0x2ea   : > { %v495_v28 = vadd.f32 %v494_v27, %v491_v26 }
 0x2ec   : > { %497 = vst.msk [vmem:[#allocation4] sm:$0xff] %vm386_vm2, %v495_v28 }
 0x2ed   : > { %v502_v32 = vpop.permute.xlu1 %501 }
 0x2ee   : > { %v504_v33 = vmul.f32 %v502_v32, %v498_v31 }
 0x2f3   : > { %v584_v29 = vld [vmem:[#allocation4] sm:$0xff] }
 0x2f4   : > { %948 = vrcp.f32 %v584_v29 }
 0x301   : > { %v949_v30 = vpop.eup %948 }
 0x302   : > { %589 = vperm.xlu1 %943, %v949_v30  }
 0x31f   : > { %v574_v34 = vpop.f32.mrf.mxu1 }
 0x320   : > { %v578_v35 = vadd.f32 %v574_v34, %v504_v33 }
 0x321   : > { %v820_v36 = vpop.f32.mrf.mxu1 }
 0x322   : > { %579 = vst.msk [vmem:[#allocation5] sm:$0xff] %vm384_vm0, %v578_v35 }
 0x329   : > { %v586_v37 = vld [vmem:[#allocation5] sm:$0xff] }
 0x37d   : > { %v590_v38 = vpop.permute.xlu1 %589 }
 0x37e   : > { %v592_v39 = vmul.f32 %v590_v38, %v586_v37 }
 0x380   : > { %593 = vst.msk [vmem:[%s377_s6] sm:$0xff] %vm384_vm0, %v592_v39 }
 0x381   : > { %1075 = shalt.err (!%p1072_p12)
}
 0x382   : > { %s1076_s4 = scalar_lea.hbm %s609_s30, 128  ;;  %s1080_s0 = scalar_lea.hbm %s1568_s27, 1024 }
 0x383   : > { %p1077_p3 = scmp.ne.s32.totalorder %s609_s30, %s1076_s4  ;;  %p1081_p6 = scmp.lt.s32.totalorder %s609_s30, %s1568_s27 }
 0x384   : > { %p1082_p4 = scmp.lt.s32.totalorder %s1080_s0, %s1076_s4 }
 0x385   : > { %p1078_p5 = pnand %p1077_p3, %p1314_p9 }
 0x386   : > { %p1083_p0 = por %p1082_p4, %p1081_p6 }
 0x387   : > { %p1079_p2 = pneg %p1078_p5 }
 0x389   : > { %p1084_p8 = pnand %p1083_p0, %p1079_p2 }
 0x38b   : > { %1087 = shalt.err (!%p1084_p8)
}
 0x38c   : > { %829 = dma.vmem_to_hbm [thread:$0]  (%p1314_p9), %s612_s11, 128, %s609_s30, %s595_s13  }
 0x38d PF: > { %s1569_s5 = sld [smem:[#allocation19_spill]]  ;;  %p849_p13 = scmp.ge.s32.totalorder %s1190_s25, 2 }
 0x38e   : > { %s1570_s7 = sld [smem:[#allocation24_spill]] }
 0x393   : > { %s623_s10 = sand.u32 1, %s1569_s5  }
 0x394   : > { %p1571_p7 = scmp.ne.s32.totalorder %s1570_s7, 0  ;;  %s624_s15 = scalar_lea.sflag [#allocation8], %s623_s10 }
 0x396   : > { %p845_p10 = pnand %p849_p13, %p1571_p7 }
 0x398   : > { %p846_p11 = pneg %p845_p10 }
 0x39a   : > { %1145 = dma.done.wait (%p846_p11), %s624_s15, 128  }
 0x39b   : > { %1147 = vsyncadd (%p846_p11), %s624_s15, 4294967168  ;;  %s26_s25 = sadd.s32 1, %s1190_s25   ;;  %s1572_s26 = sld [smem:[#allocation25_spill]] }
 0x39c   : > { %p23_p1 = scmp.ge.s32.totalorder %s26_s25, 10   ;;  %s1573_s21 = sld [smem:[#allocation20_spill]] }
 0x39d   : > { %s1574_s23 = sld [smem:[#allocation21_spill]]  ;;  %s1576_s15 = smov %s1154_s16 }
 0x39e   : > { %s1575_s6 = sld [smem:[#allocation22_spill]]  ;;  %s1577_s16 = smov %s1158_s17 }
 0x39f   : > { %s1578_s17 = smov %s1400_s28  ;;  %s1579_s18 = smov %s1166_s19 }
 0x3a0   : > { %s1580_s19 = smov %s1170_s20  ;;  %s1582_s22 = smov %s1186_s24 }
 0x3a1   : > { %s1581_s20 = smov %s1572_s26  ;;  %25 = sbr.rel (!%p23_p1) target bundleno = 17 (0x11), region = 126 }
 0x3a4   : > { %s1583_s24 = smov %s1575_s6 }
 0x3a6   :  { %629 = vsyncpa [#allocation7], 1 }
 0x3a7   :  { %631 = vsyncpa [#allocation7 + $0x1], 1 }
 0x3a8   :  { %632 = vsyncpa [#allocation10], 1 }
 0x3a9   :  { %634 = vsyncpa [#allocation10 + $0x1], 1 }
 0x3aa   :  { %635 = vsyncpa [#allocation13], 1 }
 0x3ab   :  { %637 = vsyncpa [#allocation13 + $0x1], 1 }
 0x3ac   :  { %638 = vsyncpa [#allocation8], 1 }
 0x3ad   :  { %640 = vsyncpa [#allocation8 + $0x1], 1 }

</bundles_post_ra>
